<compile_context>
chip_gen: v5e
topology: v5e:2x2
jax: 0.10.0
libtpu: 0.0.40
codegen_flags: <defaults>
</compile_context>

<pallas_src>
import functools

import jax
import jax.numpy as jnp
from jax.experimental import pallas as pl
from jax.experimental.pallas import tpu as pltpu


def _cdiv(a, b):
    return -(-a // b)


def _round_up(x, m):
    return ((x + m - 1) // m) * m


# ---------------------------------------------------------------------------
# Pallas kernel: one (image, HW-tile) block of  sigmoid(W @ X + b)
#   x_ref: (K, tile_hw)    activations, spatial on the lane dim (lane-dense)
#   w_ref: (Cout, K)       grid-invariant -> resident in VMEM
#   b_ref: (Cout, 1)       grid-invariant -> resident in VMEM
#   o_ref: (Cout, tile_hw) lane-dense output block
# ---------------------------------------------------------------------------
def _conv_sigmoid_kernel(x_ref, w_ref, b_ref, o_ref, *, apply_sigmoid):
    # f32 end-to-end: this op is HBM-bandwidth bound (a few FLOPs/pixel), so full-precision
    # compute is free and exact; accumulation stays f32 via preferred_element_type.
    y = jnp.dot(w_ref[...], x_ref[...], preferred_element_type=jnp.float32)
    y = y + b_ref[...]
    if apply_sigmoid:
        y = jax.nn.sigmoid(y)
    o_ref[...] = y.astype(o_ref.dtype)


def _choose_tile_hw(hw, n_imgs, k_in, c_out, budget_bytes=16 << 20):
    """Pick the lane (HW) tile size.

    VMEM accounting uses sublane-padded widths (blocks are stored padded to 8 sublanes):
    double-buffered f32 input + output blocks must fit in `budget_bytes` (safe under v7x's
    64 MiB/TC with vmem_limit_bytes=40 MiB). Also keeps enough grid points so both v7x
    TensorCores get work and the DMA pipeline has steps to hide latency.
    """
    per_lane = 2 * 4 * (_round_up(k_in, 8) + _round_up(c_out, 8))  # 2 buffers each, f32
    tile = budget_bytes // max(per_lane, 1)
    tile = min(tile, 1 << 16)                                # cap single-DMA block size
    min_tiles = max(1, 8 // max(n_imgs, 1))                  # aim for >= ~8 total grid points
    tile = min(tile, _round_up(_cdiv(hw, min_tiles), 128))
    tile = max(128, (tile // 128) * 128)                     # lane multiple
    if hw <= tile:
        return hw                                            # full-extent block is always legal
    return tile


def _conv1x1_bias_sigmoid(x3d, w2d, bias, *, apply_sigmoid=True):
    """x3d: (N, K, HW) f32; w2d: (Cout, K); bias: (Cout,). Returns (N, Cout, HW) f32."""
    N, K, HW = x3d.shape
    Cout = w2d.shape[0]

    tile_hw = _choose_tile_hw(HW, N, K, Cout)
    n_hw = _cdiv(HW, tile_hw)

    w = w2d.astype(jnp.float32)
    b = bias.astype(jnp.float32).reshape(Cout, 1)

    kernel = functools.partial(_conv_sigmoid_kernel, apply_sigmoid=apply_sigmoid)

    return pl.pallas_call(
        kernel,
        out_shape=jax.ShapeDtypeStruct((N, Cout, HW), jnp.float32),
        grid_spec=pltpu.PrefetchScalarGridSpec(
            num_scalar_prefetch=0,
            grid=(N, n_hw),
            in_specs=[
                # Streamed activation block: channels on sublanes, spatial on lanes.
                pl.BlockSpec((None, K, tile_hw), lambda n, t: (n, 0, t)),
                # Grid-invariant -> DMA'd once, stays resident in VMEM.
                pl.BlockSpec((Cout, K), lambda n, t: (0, 0)),
                pl.BlockSpec((Cout, 1), lambda n, t: (0, 0)),
            ],
            out_specs=pl.BlockSpec((None, Cout, tile_hw), lambda n, t: (n, 0, t)),
        ),
        compiler_params=pltpu.CompilerParams(
            # Output blocks are disjoint along both axes -> both parallel (v7x megacore split).
            dimension_semantics=("parallel", "parallel"),
            vmem_limit_bytes=40 << 20,   # > 16 MiB streamed budget + resident weights; < v7x 64 MiB
        ),
    )(x3d, w, b)


def out_conv_block_forward(x_nchw, weight, bias, *, stride=1, with_nonlinearity=True):
    """OutConvBlock forward: Conv2d(kernel_size=k, stride=s, padding=0) -> optional Sigmoid.

    Consumes and produces NCHW directly (no NHWC transposes): per image the 1x1 conv is
    out[n] = W(Cout,Cin) @ x[n](Cin, H*W) + b with the spatial axis on the 128-lane dim.
    Weight is in PyTorch layout (Cout, Cin, kh, kw).
    """
    N, Cin, H, W = x_nchw.shape
    Cout, _, kh, kw = weight.shape

    if kh == 1 and kw == 1:
        if stride != 1:
            x_nchw = x_nchw[:, :, ::stride, ::stride]
        Ho, Wo = x_nchw.shape[2], x_nchw.shape[3]
        x3d = x_nchw.reshape(N, Cin, Ho * Wo)            # pure view of NCHW, no data movement
        w2d = weight.reshape(Cout, Cin)
    else:
        # General k, valid padding (the module never forwards `padding` to Conv2d).
        # TODO(synk): fuse the tap accumulation into the kernel (grid axis over kh*kw taps)
        # instead of materializing im2col patches; the module's default/intended case is 1x1.
        Ho = (H - kh) // stride + 1
        Wo = (W - kw) // stride + 1
        patches = jnp.stack(
            [
                x_nchw[:, :, dh:dh + stride * Ho:stride, dw:dw + stride * Wo:stride]
                for dh in range(kh)
                for dw in range(kw)
            ],
            axis=2,
        )                                                 # (N, Cin, kh*kw, Ho, Wo)
        x3d = patches.reshape(N, Cin * kh * kw, Ho * Wo)
        w2d = weight.reshape(Cout, Cin * kh * kw)

    out3d = _conv1x1_bias_sigmoid(x3d, w2d, bias, apply_sigmoid=with_nonlinearity)
    return out3d.reshape(N, Cout, Ho, Wo)


# ---------------------------------------------------------------------------
# Demo / self-check
# ---------------------------------------------------------------------------
if __name__ == "__main__":
    key = jax.random.PRNGKey(0)
    kx, kw_, kb = jax.random.split(key, 3)

    # OutConvBlock(in_channels=4, out_channels=2) with defaults kernel_size=1, stride=1.
    N, Cin, H, W = 2, 4, 16, 16
    Cout = 2

    x = jax.random.normal(kx, (N, Cin, H, W), jnp.float32)                   # NCHW
    weight = 0.1 * jax.random.normal(kw_, (Cout, Cin, 1, 1), jnp.float32)    # PyTorch layout
    bias = 0.1 * jax.random.normal(kb, (Cout,), jnp.float32)

    out = out_conv_block_forward(x, weight, bias, stride=1, with_nonlinearity=True)
    out = jax.block_until_ready(out)

    assert out.shape == (N, Cout, H, W), out.shape
    assert bool(jnp.all(jnp.isfinite(out)))
    assert bool(jnp.all((out > 0.0) & (out < 1.0)))       # sigmoid range

    # Reference: plain JAX 1x1 conv + sigmoid, all f32 (tight tolerance: kernel is f32 too).
    ref = jnp.einsum("nchw,oc->nohw", x, weight.reshape(Cout, Cin)) + bias[None, :, None, None]
    ref = jax.nn.sigmoid(ref)
    err = float(jnp.max(jnp.abs(out - ref)))
    assert err < 1e-3, err

    print("KERNEL_OK")
</pallas_src>

<mosaic_0001>
module attributes {stable_mosaic.version = 11 : i64} {
  func.func @_conv_sigmoid_kernel(%arg0: i32, %arg1: i32, %arg2: memref<1x4x128xf32, #tpu.memory_space<vmem>>, %arg3: memref<2x4xf32, #tpu.memory_space<vmem>>, %arg4: memref<2x1xf32, #tpu.memory_space<vmem>>, %arg5: memref<1x2x128xf32, #tpu.memory_space<vmem>>) attributes {dimension_semantics = [#tpu.dimension_semantics<parallel>, #tpu.dimension_semantics<parallel>], iteration_bounds = array<i64: 2, 2>, scalar_prefetch = 0 : i64, scratch_operands = 0 : i64, tpu.core_type = #tpu.core_type<tc>, window_params = [{transform_indices = @transform_0, window_bounds = array<i64: 1, 4, 128>}, {pipeline_mode = #tpu.pipeline_mode<synchronous>, transform_indices = @transform_1, window_bounds = array<i64: 2, 4>}, {pipeline_mode = #tpu.pipeline_mode<synchronous>, transform_indices = @transform_2, window_bounds = array<i64: 2, 1>}, {transform_indices = @transform_3, window_bounds = array<i64: 1, 2, 128>}]} {
    %c0 = arith.constant 0 : index
    %c0_0 = arith.constant 0 : index
    %0 = vector.load %arg3[%c0, %c0_0] : memref<2x4xf32, #tpu.memory_space<vmem>>, vector<2x4xf32>
    %c0_1 = arith.constant 0 : index
    %c0_2 = arith.constant 0 : index
    %c0_3 = arith.constant 0 : index
    %1 = vector.load %arg2[%c0_1, %c0_2, %c0_3] : memref<1x4x128xf32, #tpu.memory_space<vmem>>, vector<1x4x128xf32>
    %2 = vector.shape_cast %1 : vector<1x4x128xf32> to vector<4x128xf32>
    %cst = arith.constant dense<0.000000e+00> : vector<2x128xf32>
    %3 = tpu.matmul %0, %2, %cst {dimension_numbers = #tpu.dot_dimension_numbers<[1], [0], [0], [1], [0, 0, 1, 1], [], []>} : vector<2x4xf32>, vector<4x128xf32>, vector<2x128xf32> -> vector<2x128xf32>
    %c0_4 = arith.constant 0 : index
    %c0_5 = arith.constant 0 : index
    %4 = vector.load %arg4[%c0_4, %c0_5] : memref<2x1xf32, #tpu.memory_space<vmem>>, vector<2x1xf32>
    %5 = vector.broadcast %4 : vector<2x1xf32> to vector<2x128xf32>
    %6 = arith.addf %3, %5 : vector<2x128xf32>
    %7 = arith.negf %6 : vector<2x128xf32>
    %8 = math.exp %7 : vector<2x128xf32>
    %cst_6 = arith.constant 1.000000e+00 : f32
    %9 = vector.broadcast %cst_6 : f32 to vector<2x128xf32>
    %10 = arith.addf %9, %8 : vector<2x128xf32>
    %11 = arith.divf %9, %10 : vector<2x128xf32>
    %c0_7 = arith.constant 0 : index
    %c0_8 = arith.constant 0 : index
    %c0_9 = arith.constant 0 : index
    %12 = vector.load %arg5[%c0_7, %c0_8, %c0_9] : memref<1x2x128xf32, #tpu.memory_space<vmem>>, vector<1x2x128xf32>
    %13 = vector.shape_cast %12 : vector<1x2x128xf32> to vector<2x128xf32>
    %14 = vector.shape_cast %11 : vector<2x128xf32> to vector<1x2x128xf32>
    tpu.vector_store %arg5[%c0_7, %c0_8, %c0_9], %14 {strides = array<i32>} : memref<1x2x128xf32, #tpu.memory_space<vmem>>, vector<1x2x128xf32>,
    return
  }
  func.func @transform_0(%arg0: i32, %arg1: i32) -> (i32, i32, i32) {
    %c0_i32 = arith.constant 0 : i32
    %c0_i32_0 = arith.constant 0 : i32
    return %arg0, %c0_i32, %arg1 : i32, i32, i32
  }
  func.func @transform_1(%arg0: i32, %arg1: i32) -> (i32, i32) {
    %c0_i32 = arith.constant 0 : i32
    %c0_i32_0 = arith.constant 0 : i32
    %c0_i32_1 = arith.constant 0 : i32
    return %c0_i32, %c0_i32_0 : i32, i32
  }
  func.func @transform_2(%arg0: i32, %arg1: i32) -> (i32, i32) {
    %c0_i32 = arith.constant 0 : i32
    %c0_i32_0 = arith.constant 0 : i32
    %c0_i32_1 = arith.constant 0 : i32
    return %c0_i32, %c0_i32_0 : i32, i32
  }
  func.func @transform_3(%arg0: i32, %arg1: i32) -> (i32, i32, i32) {
    %c0_i32 = arith.constant 0 : i32
    %c0_i32_0 = arith.constant 0 : i32
    return %arg0, %c0_i32, %arg1 : i32, i32, i32
  }
}

</mosaic_0001>

<bundles_post_ra>
// kernel: tpu_custom_call.1
= control target key start
LH: loop header
LB: loop body
LE: loop exit
PB: predicated region body
PF: predicated region fallthrough
CT: control target
= control target key end

     0   :  { %8 = vsyncpa [#allocation3], 0  ;;  %s767_s0 = inlined_call_operand.hbm [shape: f32[2,4,256], index: 0, kind: input, shape index: {}]   ;;  %s768_s1 = inlined_call_operand.vmem [shape: f32[2,4], index: 1, kind: input, shape index: {}]   ;;  %s769_s2 = inlined_call_operand.vmem [shape: f32[2,1], index: 2, kind: input, shape index: {}]   ;;  %s770_s3 = inlined_call_operand.hbm [shape: f32[2,2,256], index: 3, kind: output, shape index: {}]  }
   0x1   :  { %10 = vsyncpa [#allocation3 + $0x1], 0 }
   0x2   :  { %11 = vsyncpa [#allocation4], 0 }
   0x3   :  { %13 = vsyncpa [#allocation4 + $0x1], 0  ;;  %s618_s12 = smov 0   ;;  %s620_s13 = smov 0  }
   0x4   :  { %s622_s14 = smov 0   ;;  %s624_s15 = smov 0  }
   0x5   :  { %s626_s16 = smov 0   ;;  %s628_s17 = smov 0  }
   0x6   :  { %s630_s18 = smov 0   ;;  %s632_s19 = smov 0  }
   0x7 LB: > { %s365_s20 = sadd.s32 4294967295, %s595_s19   ;;  %s366_s21 = sadd.s32 4294967294, %s595_s19   ;;  %s595_s19 = sphi %s632_s19, %s19_s19   ;;  %s591_s18 = sphi %s630_s18, %s784_s18   ;;  %s587_s17 = sphi %s628_s17, %s783_s17   ;;  %s583_s16 = sphi %s626_s16, %s782_s16   ;;  %s579_s15 = sphi %s624_s15, %s781_s15   ;;  %s575_s14 = sphi %s622_s14, %s780_s14   ;;  %s571_s13 = sphi %s620_s13, %s779_s13   ;;  %s567_s12 = sphi %s618_s12, %s778_s12  }
   0x8   : > { %s28_s22 = sadd.s32 1, %s587_s17  ;;  %s31_s23 = sadd.s32 1, %s591_s18 }
   0x9   : > { %p29_p0 = scmp.ge.s32.totalorder %s28_s22, 2  ;;  %s40_s24 = sadd.s32 1, %s575_s14 }
   0xa   : > { %p47_p1 = scmp.ne.s32.totalorder %s575_s14, %s571_s13  ;;  %p48_p2 = scmp.eq.s32.totalorder %s595_s19, 0 }
   0xb   : > { %s786_s22 = smov (%p29_p0, %s28_s22), 0  ;;  %s788_s23 = smov (!%p29_p0, %s31_s23), %s591_s18 }
   0xc   : > { %s36_s25 = ssub.s32 %s587_s17, %s786_s22  ;;  %p671_p3 = por %p48_p2, %p47_p1 }
   0xd   : > { %p33_p4 = scmp.ge.s32.totalorder %s788_s23, 2  ;;  %p53_p5 = scmp.ne.s32.totalorder %s571_s13, %s567_s12 }
   0xe   : > { %p54_p6 = scmp.eq.s32.totalorder %s365_s20, 0  ;;  %p121_p7 = scmp.eq.s32.totalorder %s365_s20, 3 }
   0xf   : > { %s790_s23 = smov (%p33_p4, %s788_s23), 0  ;;  %p127_p10 = scmp.eq.s32.totalorder %s366_s21, 3 }
  0x10   : > { %773 = sst [smem:[#allocation8_spill]] %s790_s23  ;;  %p679_p8 = por %p54_p6, %p53_p5 }
  0x11   : > { %p683_p9 = por %p121_p7, %p47_p1  ;;  %s35_s29 = ssub.s32 %s591_s18, %s790_s23 }
  0x12   : > { %s37_s30 = sor.u32 %s36_s25, %s35_s29  ;;  %p689_p12 = por %p127_p10, %p53_p5 }
  0x13   : > { %p38_p11 = scmp.eq.s32.totalorder %s37_s30, 0  ;;  %p395_p13 = scmp.lt.s32.totalorder %s595_s19, 4 }
  0x14   : > { %s153_s5 = sand.u32 1, %s575_s14   ;;  %s370_s8 = sshll.u32 %s591_s18, 1 }
  0x15   : > { %s696_s6 = scalar_select %p38_p11, %s575_s14, %s40_s24  }
  0x16   : > { %s369_s7 = sshll.u32 %s153_s5, 2  ;;  %s161_s9 = sadd.s32 %s587_s17, %s370_s8 }
  0x17   : > { %s157_s10 = scalar_lea.vmem [#allocation2], %s369_s7  ;;  %s371_s20 = sshll.u32 %s161_s9, 2 }
  0x18   : > { %s167_s11 = sshll.u32 %s157_s10, 4  ;;  %s163_s29 = scalar_lea.hbm %s767_s0, %s371_s20  ;;  %s168_s11 = int_to_ptr.vmem [resolvable:$true] %s167_s11 }
  0x19   : > { %p388_p0 = pnand %p395_p13, %p671_p3  ;;  %s165_s30 = sshll.u32 %s163_s29, 4  ;;  %s166_s30 = int_to_ptr.hbm [resolvable:$true] %s165_s30 }
  0x1a   : > { %p372_p1 = scmp.ge.s32.totalorder %s595_s19, 1  ;;  %s154_s23 = scalar_lea.sflag [#allocation3], %s153_s5 }
  0x1b   : > { %390 = dma.hbm_to_vmem [thread:$0]  (!%p388_p0), %s166_s30, 64, %s168_s11, %s154_s23  }
  0x1c   : > { %p172_p2 = scmp.lt.s32.totalorder %s595_s19, 5 }
  0x1e   : > { %p173_p4 = pnand %p372_p1, %p172_p2 }
  0x1f   : > { %s708_s24 = sand.u32 (!%p173_p4), 1, %s571_s13  }
  0x20   : > { %176 = sbr.rel (%p173_p4) target bundleno = 199 (0xc7), region = 32  ;;  %s373_s7 = sshll.u32 (!%p173_p4), %s708_s24, 2 }
  0x21   : > { %s179_s8 = scalar_lea.sflag (!%p173_p4), [#allocation3], %s708_s24  ;;  %s182_s9 = scalar_lea.vmem (!%p173_p4), [#allocation2], %s373_s7 }
  0x25   : > { %558 = dma.done.wait (%p679_p8), %s179_s8, 64  }
  0x26   : > { %560 = vsyncadd (%p679_p8), %s179_s8, 4294967232  ;;  %v597_v0 = vmov 0   ;;  %vm218_vm0 = vcmask 1043456   ;;  %vm214_vm1 = vcmask 31744   ;;  %v207_v1 = vld [vmem:[%s182_s9] sm:$0xf] }
  0x27   : > { %462 = vset.pattern.permute.xlu0 %v597_v0  ;;  %v206_v2 = vld [vmem:[%s768_s1] sm:$0x3]  ;;  %375 = vmatpush.msk.msra.mxu0 %vm218_vm0, %v207_v1  ;;  %s379_s27 = sshll.u32 %s583_s16, 1  ;;  %s374_s20 = sshll.u32 %s708_s24, 1 }
  0x28   : > { %v208_v3 = vld [vmem:[%s769_s2] sm:$0x3]  ;;  %376 = vmatmul.msk.f32.vlgmr.msra.gmra.mxu0 %vm214_vm1, %v206_v2  ;;  %s273_s11 = sadd.s32 %s579_s15, %s379_s27  ;;  %s205_s7 = scalar_lea.vmem [#allocation5], %s374_s20 }
  0x29   : > { %211 = vperm.xlu0 %462, %v208_v3   ;;  %s380_s21 = sshll.u32 %s273_s11, 1  ;;  %s277_s8 = sshll.u32 %s205_s7, 4  ;;  %s278_s8 = int_to_ptr.vmem [resolvable:$true] %s277_s8 }
  0x2a   : > { %s275_s30 = scalar_lea.hbm %s770_s3, %s380_s21  ;;  %s263_s15 = scalar_lea.sflag [#allocation4], %s708_s24 }
  0x2b   : > { %s279_s9 = sshll.u32 %s275_s30, 4  ;;  %s517_s10 = scalar_lea.hbm %s770_s3, 8  ;;  %s280_s9 = int_to_ptr.hbm [resolvable:$true] %s279_s9 }
  0x2c   : > { %s511_s16 = sshra.s32 %s280_s9, 4  ;;  %s512_s16 = int_to_ptr.hbm [resolvable:$true] %s511_s16 }
  0x2d   : > { %s513_s23 = scalar_lea.hbm %s512_s16, 2  ;;  %p518_p7 = scmp.lt.s32.totalorder %s512_s16, %s770_s3 }
  0x2e   : > { %p514_p3 = scmp.ne.s32.totalorder %s512_s16, %s513_s23  ;;  %p519_p8 = scmp.lt.s32.totalorder %s517_s10, %s513_s23 }
  0x30   : > { %p515_p5 = pnand %p514_p3, %p683_p9  ;;  %p520_p10 = por %p519_p8, %p518_p7 }
  0x32   : > { %p516_p6 = pneg %p515_p5 }
  0x34   : > { %p521_p11 = pnand %p520_p10, %p516_p6 }
  0x9b   : > { %v212_v4 = vpop.permute.xlu0 %211 }
  0xa5   : > { %v239_v5 = vpop.f32.mrf.mxu0 }
  0xa6   : > { %v240_v6 = vadd.f32 %v239_v5, %v212_v4 }
  0xa8   : > { %v377_v7 = vmul.f32 -1.442695, %v240_v6 }
  0xaa   : > { %463 = vpow2.f32 %v377_v7 }
  0xb0   : > { %v464_v8 = vpop.eup %463 }
  0xb1   : > { %v245_v9 = vadd.f32 1.0, %v464_v8 }
  0xb3   : > { %465 = vrcp.f32 %v245_v9  ;;  %v257_v13 = vand.u32 2147483648, %v245_v9  ;;  %v255_v15 = vand.u32 2147483647, %v245_v9  ;;  %vm251_vm3 = vweird.f32 %v245_v9 }
  0xb5   : > { %v258_v17 = vor.u32 1.1754944e-38, %v257_v13  ;;  %vm256_vm5 = vcmp.eq.f32.partialorder %v255_v15, 8.507059e+37 }
  0xb9   : > { %v466_v10 = vpop.eup %465 }
  0xba   : > { %v247_v11 = vmul.f32 %v466_v10, %v245_v9  ;;  %vm252_vm2 = vweird.f32 %v466_v10 }
  0xbb   : > { %vm253_vm4 = vmor %vm251_vm3, %vm252_vm2 }
  0xbc   : > { %v248_v12 = vsub.f32 1.0, %v247_v11 }
  0xbe   : > { %v249_v14 = vmul.f32 %v466_v10, %v248_v12 }
  0xc0   : > { %v250_v16 = vadd.f32 %v466_v10, %v249_v14 }
  0xc2   : > { %v254_v18 = vsel %vm253_vm4, %v466_v10, %v250_v16 }
  0xc3   : > { %v259_v19 = vsel %vm256_vm5, %v258_v17, %v254_v18 }
  0xc4   : > { %261 = vst [vmem:[%s205_s7] sm:$0x3] %v259_v19 }
  0xc5   : > { %524 = shalt.err (!%p521_p11)
}
  0xc6   : > { %385 = dma.vmem_to_hbm [thread:$0]  (%p683_p9), %s278_s8, 32, %s280_s9, %s263_s15  }
  0xc7 PF: > { %p396_p13 = scmp.ge.s32.totalorder %s595_s19, 2  ;;  %s291_s24 = sand.u32 1, %s567_s12  }
  0xc8   : > { %s292_s20 = scalar_lea.sflag [#allocation4], %s291_s24 }
  0xc9   : > { %p392_p0 = pnand %p396_p13, %p689_p12 }
  0xcb   : > { %p393_p1 = pneg %p392_p0 }
  0xcd   : > { %562 = dma.done.wait (%p393_p1), %s292_s20, 32  }
  0xce   : > { %564 = vsyncadd (%p393_p1), %s292_s20, 4294967264  ;;  %s19_s19 = sadd.s32 1, %s595_s19   ;;  %s777_s28 = sld [smem:[#allocation8_spill]] }
  0xcf   : > { %p16_p2 = scmp.ge.s32.totalorder %s19_s19, 6   ;;  %s778_s12 = smov %s571_s13 }
  0xd0   : > { %s779_s13 = smov %s575_s14  ;;  %s780_s14 = smov %s696_s6 }
  0xd1   : > { %s781_s15 = smov %s587_s17  ;;  %s782_s16 = smov %s591_s18 }
  0xd2   : > { %s783_s17 = smov %s786_s22  ;;  %18 = sbr.rel (!%p16_p2) target bundleno = 7 (0x7), region = 77 }
  0xd4   : > { %s784_s18 = smov %s777_s28 }
  0xd7   :  { %298 = vsyncpa [#allocation3], 1 }
  0xd8   :  { %300 = vsyncpa [#allocation3 + $0x1], 1 }
  0xd9   :  { %301 = vsyncpa [#allocation4], 1 }
  0xda   :  { %303 = vsyncpa [#allocation4 + $0x1], 1 }

</bundles_post_ra>
